<compile_context>
chip_gen: v6e
topology: v6e:2x2x1
jax: 0.10.0
libtpu: 0.0.40
codegen_flags: <defaults>
</compile_context>

<pallas_src>
import math

import jax
import jax.numpy as jnp
from jax.experimental import pallas as pl
from jax.experimental.pallas import tpu as pltpu

# Batch, encoder seq, decoder seq, num special tokens, model dim.
B, N, T, S, D = 2, 8, 8, 4, 32
S_PAD = 8                  # special-token rows padded to a sublane multiple of 8
MROW = S_PAD + N           # concat rows per batch (16); padded pointer width
M = S + N                  # real pointer length (12)
BN, BT = B * N, B * T
EPS = 1e-6
NEG = float(jnp.finfo(jnp.float32).min)   # exact PyTorch masked_fill value
BIAS_NEG = -1e30                          # additive softmax mask (safe vs. -inf)
INV_SQRT_D = 1.0 / math.sqrt(D)
MATMUL_DTYPE = jnp.bfloat16               # MXU-native inputs; accumulate in f32


def _rmsnorm(x, w, eps=EPS):
    # x: (rows, D) float32, w: (1, D)
    var = jnp.mean(x * x, axis=-1, keepdims=True)
    return w * (x * jax.lax.rsqrt(var + eps))


def absa_head_kernel(he_ref, ee_ref, hd_ref, cdn_ref, bias_ref,
                     w_ref, vec_ref, out_ref):
    f32 = jnp.float32
    he = he_ref[...]          # (B*N, D)   encoder last hidden state H_e
    ee = ee_ref[...]          # (B*N, D)   encoder input word embeddings E_e
    hd = hd_ref[...]          # (B*T, D)   decoder last hidden state H_d
    cdn = cdn_ref[...]        # (S_PAD, D) RMSNorm(C_d), rows S..S_PAD-1 zero-padded
    bias = bias_ref[...]      # (B, T, MROW) additive mask: 0 keep / BIAS_NEG mask+pad

    vecs = vec_ref[...]                               # (6, D) f32
    b1, b2, bge, bga = vecs[0:1], vecs[1:2], vecs[2:3], vecs[3:4]
    rms_h, rms_f = vecs[4:5], vecs[5:6]

    w1, w2 = w_ref[0], w_ref[1]                       # encoder MLP (bf16)
    wge_h, wge_e = w_ref[2], w_ref[3]                 # encoder gate halves
    wga_a, wga_h = w_ref[4], w_ref[5]                 # attention gate halves
    wq, wk, wv = w_ref[6], w_ref[7], w_ref[8]         # attention projections

    bf = lambda x: x.astype(MATMUL_DTYPE)             # cast only at dot inputs
    dotw = lambda a, w: jnp.dot(bf(a), w, preferred_element_type=f32)

    # ---- encoder MLP: Linear -> ReLU -> (Dropout=id) -> Linear ----
    h1 = jnp.maximum(dotw(he, w1) + b1, 0.0)
    hhat = dotw(h1, w2) + b2

    # ---- encoder gating: sigmoid(cat([H_hat_e, E_e]) @ Wge) via split halves ----
    g = jax.nn.sigmoid(dotw(hhat, wge_h) + dotw(ee, wge_e) + bge)
    hovl = g * hhat + (1.0 - g) * ee                  # H_ovl_e
    hovln = _rmsnorm(hovl, rms_h)                     # (B*N, D), f32

    # ---- conc_e: [RMS(C_d) padded to 8 rows ; RMS(H_ovl_e)] per batch ----
    # All pieces are 8-row (sublane) aligned and there are no dead rows.
    pieces = []
    for b in range(B):
        pieces += [cdn, hovln[b * N:(b + 1) * N]]
    conc_flat = jnp.concatenate(pieces, axis=0)       # (B*MROW, D) = (32, D)
    conc_bf = bf(conc_flat)
    conc3 = conc_bf.reshape(B, MROW, D)

    # ---- custom attention: separate K/V dots (fused K|V would lane-split at 32) ----
    keys = jnp.dot(conc_bf, wk, preferred_element_type=f32).reshape(B, MROW, D)
    values = jnp.dot(conc_bf, wv, preferred_element_type=f32).reshape(B, MROW, D)
    queries = dotw(hd, wq).reshape(B, T, D)

    # TODO(synk): at real shapes, check lowered MLIR for per-batch vxpose on these
    #             two einsums; if present, materialize keys^T / conc^T in
    #             (B, D, MROW) once and reuse for both scores and pointer matmuls.
    scores = jnp.einsum('btd,bmd->btm', bf(queries), bf(keys),
                        preferred_element_type=f32)
    scores = scores * INV_SQRT_D + bias               # dimension norm + mask
    smax = jnp.max(scores, axis=-1, keepdims=True)
    p = jnp.exp(scores - smax)
    # Exact reciprocal: only B*T=16 denominators, EUP saving of approx=True is nil.
    attnw = p * pl.reciprocal(jnp.sum(p, axis=-1, keepdims=True), approx=False)
    attn = jnp.einsum('btm,bmd->btd', bf(attnw), bf(values),
                      preferred_element_type=f32).reshape(BT, D)

    # ---- attention gating against H_d (split halves) + final RMSNorm (f32) ----
    g2 = jax.nn.sigmoid(dotw(attn, wga_a) + dotw(hd, wga_h) + bga)
    gated = g2 * attn + (1.0 - g2) * hd
    normed = _rmsnorm(gated, rms_f).reshape(B, T, D)

    # ---- pointer logits P_t, masked with exact finfo.min like the PyTorch module ----
    pt = jnp.einsum('btd,bmd->btm', bf(normed), conc3, preferred_element_type=f32)
    out_ref[...] = jnp.where(bias < 0.0, NEG, pt)


def pack_params(params, cd):
    """One-time parameter packing (cache the result; NOT on the per-call path)."""
    (w1, b1, w2, b2, wge, bge, wga, bga, rmsc, rmsh, rmsf, wk, wq, wv) = params
    # (9, D, D) bf16 weight slab: MLP, split gate halves, Q/K/V projections.
    wstack = jnp.stack([w1, w2, wge[:D], wge[D:], wga[:D], wga[D:],
                        wq, wk, wv]).astype(MATMUL_DTYPE)
    # (6, D) f32 bias / RMS-weight slab (elementwise path stays f32).
    vecs = jnp.concatenate([b1, b2, bge, bga, rmsh, rmsf], axis=0)
    # Batch-invariant RMSNorm(C_d), zero-padded to S_PAD rows (aligned concat).
    var = jnp.mean(cd * cd, axis=-1, keepdims=True)
    cdn = rmsc * (cd * jax.lax.rsqrt(var + EPS))
    cdn_pad = jnp.zeros((S_PAD, D), jnp.float32).at[:S, :].set(cdn)
    return wstack, vecs, cdn_pad


def absa_head(he, hd, ee, head_mask, packed):
    """he:(B,N,D) hd:(B,T,D) ee:(B,N,D) head_mask:(B,T,M) f32; packed=pack_params(...)."""
    wstack, vecs, cdn_pad = packed
    he_f = he.reshape(BN, D)
    ee_f = ee.reshape(BN, D)
    hd_f = hd.reshape(BT, D)

    # Additive mask in the 16-lane padded layout: lanes [0:S]=special tokens,
    # [S:S_PAD]=alignment padding (always masked), [S_PAD:MROW]=encoder tokens.
    keep = head_mask > 0.5
    bias = jnp.full((B, T, MROW), BIAS_NEG, jnp.float32)
    bias = bias.at[:, :, :S].set(jnp.where(keep[:, :, :S], 0.0, BIAS_NEG))
    bias = bias.at[:, :, S_PAD:S_PAD + N].set(jnp.where(keep[:, :, S:], 0.0, BIAS_NEG))

    full = lambda shape: pl.BlockSpec(shape, lambda i: (0,) * len(shape))
    out = pl.pallas_call(
        absa_head_kernel,
        out_shape=jax.ShapeDtypeStruct((B, T, MROW), jnp.float32),
        grid_spec=pltpu.PrefetchScalarGridSpec(
            num_scalar_prefetch=0,
            grid=(1,),                      # batch collapsed into one grid step
            in_specs=[
                full((BN, D)),              # H_e
                full((BN, D)),              # E_e
                full((BT, D)),              # H_d
                full((S_PAD, D)),           # RMSNorm(C_d), padded
                full((B, T, MROW)),         # additive head-mask bias
                full((9, D, D)),            # packed bf16 weights
                full((6, D)),               # packed f32 biases / RMS weights
            ],
            out_specs=full((B, T, MROW)),
        ),
        compiler_params=pltpu.CompilerParams(
            dimension_semantics=("arbitrary",)),
    )(he_f, ee_f, hd_f, cdn_pad, bias, wstack, vecs)
    # Drop the 4 alignment-pad lanes: columns = [special 0:S | encoder S_PAD:MROW].
    return jnp.concatenate([out[:, :, :S], out[:, :, S_PAD:S_PAD + N]], axis=-1)


def reference(he, hd, ee, cd, head_mask, params, matmul_dtype=jnp.float32):
    """Plain-JAX reference mirroring the PyTorch forward (eval mode).

    matmul_dtype=f32 -> exact module semantics; matmul_dtype=bf16 -> the same
    forward under the kernel's bf16-input / f32-accumulate matmul policy.
    """
    (w1, b1, w2, b2, wge, bge, wga, bga, rmsc, rmsh, rmsf, wk, wq, wv) = params
    md = matmul_dtype
    dot = lambda a, b: jnp.dot(a.astype(md), b.astype(md),
                               preferred_element_type=jnp.float32)
    ein = lambda eq, a, b: jnp.einsum(eq, a.astype(md), b.astype(md),
                                      preferred_element_type=jnp.float32)

    def rms(x, w):
        var = jnp.mean(x * x, axis=-1, keepdims=True)
        return w * (x * jax.lax.rsqrt(var + EPS))

    hhat = dot(jnp.maximum(dot(he, w1) + b1, 0.0), w2) + b2
    g = jax.nn.sigmoid(dot(jnp.concatenate([hhat, ee], axis=-1), wge) + bge)
    hovl = g * hhat + (1.0 - g) * ee

    cdn = rms(cd, rmsc)
    hovln = rms(hovl, rmsh)
    conc = jnp.concatenate([jnp.broadcast_to(cdn[None], (B, S, D)), hovln], axis=1)

    keys = dot(conc, wk)
    queries = dot(hd, wq)
    values = dot(conc, wv)
    scores = ein('btd,bnd->btn', queries, keys)
    scores = jnp.where(head_mask > 0.5, scores, NEG)
    scores = scores / math.sqrt(D)
    attnw = jax.nn.softmax(scores, axis=-1)
    attn_out = ein('btn,bnd->btd', attnw, values)

    g2 = jax.nn.sigmoid(dot(jnp.concatenate([attn_out, hd], axis=-1), wga) + bga)
    gated = g2 * attn_out + (1.0 - g2) * hd
    normed = rms(gated, rmsf)

    pt = ein('btd,bnd->btn', normed, conc)
    return jnp.where(head_mask > 0.5, pt, NEG)


if __name__ == "__main__":
    key = jax.random.PRNGKey(0)
    ks = jax.random.split(key, 20)

    # Synthetic backbone activations (stand-ins for the HF encoder/decoder).
    he = jax.random.normal(ks[0], (B, N, D), jnp.float32)       # H_e
    hd = jax.random.normal(ks[1], (B, T, D), jnp.float32)       # H_d
    ee = jax.random.normal(ks[2], (B, N, D), jnp.float32)       # E_e
    cd = jax.random.normal(ks[3], (S, D), jnp.float32)          # special-token embs

    # head_mask: True = keep; guarantee at least col 0 kept per row (the kernel's
    # padded-lane softmax diverges from the reference only on fully-masked rows).
    mask_bool = jax.random.uniform(ks[4], (B, T, M)) > 0.3
    mask_bool = mask_bool.at[:, :, 0].set(True)
    head_mask = mask_bool.astype(jnp.float32)

    sc = 0.1
    params = (
        sc * jax.random.normal(ks[5], (D, D), jnp.float32),      # W1 (in,out)
        sc * jax.random.normal(ks[6], (1, D), jnp.float32),      # b1
        sc * jax.random.normal(ks[7], (D, D), jnp.float32),      # W2
        sc * jax.random.normal(ks[8], (1, D), jnp.float32),      # b2
        sc * jax.random.normal(ks[9], (2 * D, D), jnp.float32),  # encoder gate W
        sc * jax.random.normal(ks[10], (1, D), jnp.float32),     # encoder gate b
        sc * jax.random.normal(ks[11], (2 * D, D), jnp.float32), # attention gate W
        sc * jax.random.normal(ks[12], (1, D), jnp.float32),     # attention gate b
        1.0 + 0.01 * jax.random.normal(ks[13], (1, D), jnp.float32),  # RMS concats
        1.0 + 0.01 * jax.random.normal(ks[14], (1, D), jnp.float32),  # RMS hiddens
        1.0 + 0.01 * jax.random.normal(ks[15], (1, D), jnp.float32),  # RMS final
        sc * jax.random.normal(ks[16], (D, D), jnp.float32),     # W_key
        sc * jax.random.normal(ks[17], (D, D), jnp.float32),     # W_query
        sc * jax.random.normal(ks[18], (D, D), jnp.float32),     # W_value
    )

    # One-time packing (cached across calls in a real model).
    packed = pack_params(params, cd)

    out = jax.block_until_ready(absa_head(he, hd, ee, head_mask, packed))
    assert out.shape == (B, T, M)

    keep = head_mask > 0.5
    # Tight check vs. a reference using the same bf16-input / f32-accumulate
    # matmul policy (residual diff = accumulation order / transcendental impls).
    ref_bf = jax.block_until_ready(
        reference(he, hd, ee, cd, head_mask, params, MATMUL_DTYPE))
    diff_bf = jnp.max(jnp.abs(jnp.where(keep, out - ref_bf, 0.0)))
    assert float(diff_bf) < 2e-3, f"mismatch vs bf16-policy reference: {float(diff_bf)}"

    # Sanity check vs. the pure-f32 reference: the only difference is bf16 matmul
    # rounding, which must stay small relative to the logit scale.
    ref32 = jax.block_until_ready(
        reference(he, hd, ee, cd, head_mask, params, jnp.float32))
    num = jnp.sqrt(jnp.sum(jnp.where(keep, (out - ref32) ** 2, 0.0)))
    den = jnp.sqrt(jnp.sum(jnp.where(keep, ref32 ** 2, 0.0)))
    rel = float(num / den)
    assert rel < 0.1, f"bf16 drift vs f32 reference too large: {rel}"

    print("KERNEL_OK")
</pallas_src>

<mosaic_0001>
module attributes {stable_mosaic.version = 11 : i64} {
  func.func @absa_head_kernel(%arg0: i32, %arg1: memref<16x32xf32, #tpu.memory_space<vmem>>, %arg2: memref<16x32xf32, #tpu.memory_space<vmem>>, %arg3: memref<16x32xf32, #tpu.memory_space<vmem>>, %arg4: memref<8x32xf32, #tpu.memory_space<vmem>>, %arg5: memref<2x8x16xf32, #tpu.memory_space<vmem>>, %arg6: memref<9x32x32xbf16, #tpu.memory_space<vmem>>, %arg7: memref<6x32xf32, #tpu.memory_space<vmem>>, %arg8: memref<2x8x16xf32, #tpu.memory_space<vmem>>) attributes {dimension_semantics = [#tpu.dimension_semantics<arbitrary>], iteration_bounds = array<i64: 1>, scalar_prefetch = 0 : i64, scratch_operands = 0 : i64, tpu.core_type = #tpu.core_type<tc>, window_params = [{pipeline_mode = #tpu.pipeline_mode<synchronous>, transform_indices = @transform_0, window_bounds = array<i64: 16, 32>}, {pipeline_mode = #tpu.pipeline_mode<synchronous>, transform_indices = @transform_1, window_bounds = array<i64: 16, 32>}, {pipeline_mode = #tpu.pipeline_mode<synchronous>, transform_indices = @transform_2, window_bounds = array<i64: 16, 32>}, {pipeline_mode = #tpu.pipeline_mode<synchronous>, transform_indices = @transform_3, window_bounds = array<i64: 8, 32>}, {pipeline_mode = #tpu.pipeline_mode<synchronous>, transform_indices = @transform_4, window_bounds = array<i64: 2, 8, 16>}, {pipeline_mode = #tpu.pipeline_mode<synchronous>, transform_indices = @transform_5, window_bounds = array<i64: 9, 32, 32>}, {pipeline_mode = #tpu.pipeline_mode<synchronous>, transform_indices = @transform_6, window_bounds = array<i64: 6, 32>}, {pipeline_mode = #tpu.pipeline_mode<synchronous>, transform_indices = @transform_7, window_bounds = array<i64: 2, 8, 16>}]} {
    %c0 = arith.constant 0 : index
    %c0_0 = arith.constant 0 : index
    %0 = vector.load %arg1[%c0, %c0_0] : memref<16x32xf32, #tpu.memory_space<vmem>>, vector<16x32xf32>
    %c0_1 = arith.constant 0 : index
    %c0_2 = arith.constant 0 : index
    %1 = vector.load %arg2[%c0_1, %c0_2] : memref<16x32xf32, #tpu.memory_space<vmem>>, vector<16x32xf32>
    %c0_3 = arith.constant 0 : index
    %c0_4 = arith.constant 0 : index
    %2 = vector.load %arg3[%c0_3, %c0_4] : memref<16x32xf32, #tpu.memory_space<vmem>>, vector<16x32xf32>
    %c0_5 = arith.constant 0 : index
    %c0_6 = arith.constant 0 : index
    %3 = vector.load %arg4[%c0_5, %c0_6] : memref<8x32xf32, #tpu.memory_space<vmem>>, vector<8x32xf32>
    %c0_7 = arith.constant 0 : index
    %c0_8 = arith.constant 0 : index
    %c0_9 = arith.constant 0 : index
    %4 = vector.load %arg5[%c0_7, %c0_8, %c0_9] : memref<2x8x16xf32, #tpu.memory_space<vmem>>, vector<2x8x16xf32>
    %c0_10 = arith.constant 0 : index
    %c0_11 = arith.constant 0 : index
    %5 = vector.load %arg7[%c0_10, %c0_11] : memref<6x32xf32, #tpu.memory_space<vmem>>, vector<6x32xf32>
    %6 = vector.extract_strided_slice %5 {offsets = [0, 0], sizes = [1, 32], strides = [1, 1]} : vector<6x32xf32> to vector<1x32xf32>
    %7 = vector.extract_strided_slice %5 {offsets = [1, 0], sizes = [1, 32], strides = [1, 1]} : vector<6x32xf32> to vector<1x32xf32>
    %8 = vector.extract_strided_slice %5 {offsets = [2, 0], sizes = [1, 32], strides = [1, 1]} : vector<6x32xf32> to vector<1x32xf32>
    %9 = vector.extract_strided_slice %5 {offsets = [3, 0], sizes = [1, 32], strides = [1, 1]} : vector<6x32xf32> to vector<1x32xf32>
    %10 = vector.extract_strided_slice %5 {offsets = [4, 0], sizes = [1, 32], strides = [1, 1]} : vector<6x32xf32> to vector<1x32xf32>
    %11 = vector.extract_strided_slice %5 {offsets = [5, 0], sizes = [1, 32], strides = [1, 1]} : vector<6x32xf32> to vector<1x32xf32>
    %c0_12 = arith.constant 0 : index
    %c0_13 = arith.constant 0 : index
    %c0_14 = arith.constant 0 : index
    %12 = vector.load %arg6[%c0_12, %c0_13, %c0_14] : memref<9x32x32xbf16, #tpu.memory_space<vmem>>, vector<1x32x32xbf16>
    %13 = vector.shape_cast %12 : vector<1x32x32xbf16> to vector<32x32xbf16>
    %c1 = arith.constant 1 : index
    %c0_15 = arith.constant 0 : index
    %c0_16 = arith.constant 0 : index
    %14 = vector.load %arg6[%c1, %c0_15, %c0_16] : memref<9x32x32xbf16, #tpu.memory_space<vmem>>, vector<1x32x32xbf16>
    %15 = vector.shape_cast %14 : vector<1x32x32xbf16> to vector<32x32xbf16>
    %c2 = arith.constant 2 : index
    %c0_17 = arith.constant 0 : index
    %c0_18 = arith.constant 0 : index
    %16 = vector.load %arg6[%c2, %c0_17, %c0_18] : memref<9x32x32xbf16, #tpu.memory_space<vmem>>, vector<1x32x32xbf16>
    %17 = vector.shape_cast %16 : vector<1x32x32xbf16> to vector<32x32xbf16>
    %c3 = arith.constant 3 : index
    %c0_19 = arith.constant 0 : index
    %c0_20 = arith.constant 0 : index
    %18 = vector.load %arg6[%c3, %c0_19, %c0_20] : memref<9x32x32xbf16, #tpu.memory_space<vmem>>, vector<1x32x32xbf16>
    %19 = vector.shape_cast %18 : vector<1x32x32xbf16> to vector<32x32xbf16>
    %c4 = arith.constant 4 : index
    %c0_21 = arith.constant 0 : index
    %c0_22 = arith.constant 0 : index
    %20 = vector.load %arg6[%c4, %c0_21, %c0_22] : memref<9x32x32xbf16, #tpu.memory_space<vmem>>, vector<1x32x32xbf16>
    %21 = vector.shape_cast %20 : vector<1x32x32xbf16> to vector<32x32xbf16>
    %c5 = arith.constant 5 : index
    %c0_23 = arith.constant 0 : index
    %c0_24 = arith.constant 0 : index
    %22 = vector.load %arg6[%c5, %c0_23, %c0_24] : memref<9x32x32xbf16, #tpu.memory_space<vmem>>, vector<1x32x32xbf16>
    %23 = vector.shape_cast %22 : vector<1x32x32xbf16> to vector<32x32xbf16>
    %c6 = arith.constant 6 : index
    %c0_25 = arith.constant 0 : index
    %c0_26 = arith.constant 0 : index
    %24 = vector.load %arg6[%c6, %c0_25, %c0_26] : memref<9x32x32xbf16, #tpu.memory_space<vmem>>, vector<1x32x32xbf16>
    %25 = vector.shape_cast %24 : vector<1x32x32xbf16> to vector<32x32xbf16>
    %c7 = arith.constant 7 : index
    %c0_27 = arith.constant 0 : index
    %c0_28 = arith.constant 0 : index
    %26 = vector.load %arg6[%c7, %c0_27, %c0_28] : memref<9x32x32xbf16, #tpu.memory_space<vmem>>, vector<1x32x32xbf16>
    %27 = vector.shape_cast %26 : vector<1x32x32xbf16> to vector<32x32xbf16>
    %c8 = arith.constant 8 : index
    %c0_29 = arith.constant 0 : index
    %c0_30 = arith.constant 0 : index
    %28 = vector.load %arg6[%c8, %c0_29, %c0_30] : memref<9x32x32xbf16, #tpu.memory_space<vmem>>, vector<1x32x32xbf16>
    %29 = vector.shape_cast %28 : vector<1x32x32xbf16> to vector<32x32xbf16>
    %30 = arith.truncf %0 : vector<16x32xf32> to vector<16x32xbf16>
    %cst = arith.constant dense<0.000000e+00> : vector<16x32xf32>
    %31 = tpu.matmul %30, %13, %cst {dimension_numbers = #tpu.dot_dimension_numbers<[1], [0], [0], [1], [0, 0, 1, 1], [], []>} : vector<16x32xbf16>, vector<32x32xbf16>, vector<16x32xf32> -> vector<16x32xf32>
    %32 = vector.broadcast %6 : vector<1x32xf32> to vector<16x32xf32>
    %33 = arith.addf %31, %32 : vector<16x32xf32>
    %cst_31 = arith.constant 0.000000e+00 : f32
    %34 = vector.broadcast %cst_31 : f32 to vector<16x32xf32>
    %35 = arith.maximumf %33, %34 : vector<16x32xf32>
    %36 = arith.truncf %35 : vector<16x32xf32> to vector<16x32xbf16>
    %cst_32 = arith.constant dense<0.000000e+00> : vector<16x32xf32>
    %37 = tpu.matmul %36, %15, %cst_32 {dimension_numbers = #tpu.dot_dimension_numbers<[1], [0], [0], [1], [0, 0, 1, 1], [], []>} : vector<16x32xbf16>, vector<32x32xbf16>, vector<16x32xf32> -> vector<16x32xf32>
    %38 = vector.broadcast %7 : vector<1x32xf32> to vector<16x32xf32>
    %39 = arith.addf %37, %38 : vector<16x32xf32>
    %40 = arith.truncf %39 : vector<16x32xf32> to vector<16x32xbf16>
    %cst_33 = arith.constant dense<0.000000e+00> : vector<16x32xf32>
    %41 = tpu.matmul %40, %17, %cst_33 {dimension_numbers = #tpu.dot_dimension_numbers<[1], [0], [0], [1], [0, 0, 1, 1], [], []>} : vector<16x32xbf16>, vector<32x32xbf16>, vector<16x32xf32> -> vector<16x32xf32>
    %42 = arith.truncf %1 : vector<16x32xf32> to vector<16x32xbf16>
    %cst_34 = arith.constant dense<0.000000e+00> : vector<16x32xf32>
    %43 = tpu.matmul %42, %19, %cst_34 {dimension_numbers = #tpu.dot_dimension_numbers<[1], [0], [0], [1], [0, 0, 1, 1], [], []>} : vector<16x32xbf16>, vector<32x32xbf16>, vector<16x32xf32> -> vector<16x32xf32>
    %44 = arith.addf %41, %43 : vector<16x32xf32>
    %45 = vector.broadcast %8 : vector<1x32xf32> to vector<16x32xf32>
    %46 = arith.addf %44, %45 : vector<16x32xf32>
    %47 = arith.negf %46 : vector<16x32xf32>
    %48 = math.exp %47 : vector<16x32xf32>
    %cst_35 = arith.constant 1.000000e+00 : f32
    %49 = vector.broadcast %cst_35 : f32 to vector<16x32xf32>
    %50 = arith.addf %49, %48 : vector<16x32xf32>
    %51 = arith.divf %49, %50 : vector<16x32xf32>
    %52 = arith.mulf %51, %39 : vector<16x32xf32>
    %cst_36 = arith.constant 1.000000e+00 : f32
    %53 = vector.broadcast %cst_36 : f32 to vector<16x32xf32>
    %54 = arith.subf %53, %51 : vector<16x32xf32>
    %55 = arith.mulf %54, %1 : vector<16x32xf32>
    %56 = arith.addf %52, %55 : vector<16x32xf32>
    %57 = arith.mulf %56, %56 : vector<16x32xf32>
    %cst_37 = arith.constant dense<0.000000e+00> : vector<16xf32>
    %58 = vector.multi_reduction <add>, %57, %cst_37 [1] : vector<16x32xf32> to vector<16xf32>
    %59 = vector.shape_cast %58 : vector<16xf32> to vector<16x1xf32>
    %cst_38 = arith.constant 3.200000e+01 : f32
    %60 = vector.broadcast %cst_38 : f32 to vector<16x1xf32>
    %61 = arith.divf %59, %60 : vector<16x1xf32>
    %cst_39 = arith.constant 9.99999997E-7 : f32
    %62 = vector.broadcast %cst_39 : f32 to vector<16x1xf32>
    %63 = arith.addf %61, %62 : vector<16x1xf32>
    %64 = math.rsqrt %63 : vector<16x1xf32>
    %65 = vector.broadcast %64 : vector<16x1xf32> to vector<16x32xf32>
    %66 = arith.mulf %56, %65 : vector<16x32xf32>
    %67 = vector.broadcast %10 : vector<1x32xf32> to vector<16x32xf32>
    %68 = arith.mulf %67, %66 : vector<16x32xf32>
    %69 = vector.extract_strided_slice %68 {offsets = [0, 0], sizes = [8, 32], strides = [1, 1]} : vector<16x32xf32> to vector<8x32xf32>
    %70 = vector.extract_strided_slice %68 {offsets = [8, 0], sizes = [8, 32], strides = [1, 1]} : vector<16x32xf32> to vector<8x32xf32>
    %71 = tpu.concatenate %3, %69, %3, %70 in 0 : vector<8x32xf32>, vector<8x32xf32>, vector<8x32xf32>, vector<8x32xf32> -> vector<32x32xf32>
    %72 = arith.truncf %71 : vector<32x32xf32> to vector<32x32xbf16>
    %73 = vector.shape_cast %72 : vector<32x32xbf16> to vector<2x16x32xbf16>
    %cst_40 = arith.constant dense<0.000000e+00> : vector<32x32xf32>
    %74 = tpu.matmul %72, %27, %cst_40 {dimension_numbers = #tpu.dot_dimension_numbers<[1], [0], [0], [1], [0, 0, 1, 1], [], []>} : vector<32x32xbf16>, vector<32x32xbf16>, vector<32x32xf32> -> vector<32x32xf32>
    %75 = vector.shape_cast %74 : vector<32x32xf32> to vector<2x16x32xf32>
    %cst_41 = arith.constant dense<0.000000e+00> : vector<32x32xf32>
    %76 = tpu.matmul %72, %29, %cst_41 {dimension_numbers = #tpu.dot_dimension_numbers<[1], [0], [0], [1], [0, 0, 1, 1], [], []>} : vector<32x32xbf16>, vector<32x32xbf16>, vector<32x32xf32> -> vector<32x32xf32>
    %77 = vector.shape_cast %76 : vector<32x32xf32> to vector<2x16x32xf32>
    %78 = arith.truncf %2 : vector<16x32xf32> to vector<16x32xbf16>
    %cst_42 = arith.constant dense<0.000000e+00> : vector<16x32xf32>
    %79 = tpu.matmul %78, %25, %cst_42 {dimension_numbers = #tpu.dot_dimension_numbers<[1], [0], [0], [1], [0, 0, 1, 1], [], []>} : vector<16x32xbf16>, vector<32x32xbf16>, vector<16x32xf32> -> vector<16x32xf32>
    %80 = vector.shape_cast %79 : vector<16x32xf32> to vector<2x8x32xf32>
    %81 = arith.truncf %80 : vector<2x8x32xf32> to vector<2x8x32xbf16>
    %82 = arith.truncf %75 : vector<2x16x32xf32> to vector<2x16x32xbf16>
    "tpu.trace_start"() <{level = 10 : i32, message = "btd,bmd->btm"}> : () -> ()
    %cst_43 = arith.constant dense<0.000000e+00> : vector<2x8x16xf32>
    %83 = tpu.matmul %81, %82, %cst_43 {dimension_numbers = #tpu.dot_dimension_numbers<[2], [2], [1], [1], [0, 0, 0, 1, 1, 1], [0], [0]>} : vector<2x8x32xbf16>, vector<2x16x32xbf16>, vector<2x8x16xf32> -> vector<2x8x16xf32>
    "tpu.trace_stop"() : () -> ()
    %cst_44 = arith.constant 0.176776692 : f32
    %84 = vector.broadcast %cst_44 : f32 to vector<2x8x16xf32>
    %85 = arith.mulf %83, %84 : vector<2x8x16xf32>
    %86 = arith.addf %85, %4 : vector<2x8x16xf32>
    %cst_45 = arith.constant dense<0xFF800000> : vector<2x8xf32>
    %87 = vector.multi_reduction <maximumf>, %86, %cst_45 [2] : vector<2x8x16xf32> to vector<2x8xf32>
    %88 = vector.shape_cast %87 : vector<2x8xf32> to vector<2x8x1xf32>
    %89 = vector.broadcast %88 : vector<2x8x1xf32> to vector<2x8x16xf32>
    %90 = arith.subf %86, %89 : vector<2x8x16xf32>
    %91 = math.exp %90 : vector<2x8x16xf32>
    %cst_46 = arith.constant dense<0.000000e+00> : vector<2x8xf32>
    %92 = vector.multi_reduction <add>, %91, %cst_46 [2] : vector<2x8x16xf32> to vector<2x8xf32>
    %93 = vector.shape_cast %92 : vector<2x8xf32> to vector<2x8x1xf32>
    %94 = tpu.reciprocal %93 : vector<2x8x1xf32> -> vector<2x8x1xf32>
    %95 = vector.broadcast %94 : vector<2x8x1xf32> to vector<2x8x16xf32>
    %96 = arith.mulf %91, %95 : vector<2x8x16xf32>
    %97 = arith.truncf %96 : vector<2x8x16xf32> to vector<2x8x16xbf16>
    %98 = arith.truncf %77 : vector<2x16x32xf32> to vector<2x16x32xbf16>
    "tpu.trace_start"() <{level = 10 : i32, message = "btm,bmd->btd"}> : () -> ()
    %cst_47 = arith.constant dense<0.000000e+00> : vector<2x8x32xf32>
    %99 = tpu.matmul %97, %98, %cst_47 {dimension_numbers = #tpu.dot_dimension_numbers<[2], [1], [1], [2], [0, 0, 0, 1, 1, 2], [0], [0]>} : vector<2x8x16xbf16>, vector<2x16x32xbf16>, vector<2x8x32xf32> -> vector<2x8x32xf32>
    "tpu.trace_stop"() : () -> ()
    %100 = vector.shape_cast %99 : vector<2x8x32xf32> to vector<16x32xf32>
    %101 = arith.truncf %100 : vector<16x32xf32> to vector<16x32xbf16>
    %cst_48 = arith.constant dense<0.000000e+00> : vector<16x32xf32>
    %102 = tpu.matmul %101, %21, %cst_48 {dimension_numbers = #tpu.dot_dimension_numbers<[1], [0], [0], [1], [0, 0, 1, 1], [], []>} : vector<16x32xbf16>, vector<32x32xbf16>, vector<16x32xf32> -> vector<16x32xf32>
    %103 = arith.truncf %2 : vector<16x32xf32> to vector<16x32xbf16>
    %cst_49 = arith.constant dense<0.000000e+00> : vector<16x32xf32>
    %104 = tpu.matmul %103, %23, %cst_49 {dimension_numbers = #tpu.dot_dimension_numbers<[1], [0], [0], [1], [0, 0, 1, 1], [], []>} : vector<16x32xbf16>, vector<32x32xbf16>, vector<16x32xf32> -> vector<16x32xf32>
    %105 = arith.addf %102, %104 : vector<16x32xf32>
    %106 = vector.broadcast %9 : vector<1x32xf32> to vector<16x32xf32>
    %107 = arith.addf %105, %106 : vector<16x32xf32>
    %108 = arith.negf %107 : vector<16x32xf32>
    %109 = math.exp %108 : vector<16x32xf32>
    %cst_50 = arith.constant 1.000000e+00 : f32
    %110 = vector.broadcast %cst_50 : f32 to vector<16x32xf32>
    %111 = arith.addf %110, %109 : vector<16x32xf32>
    %112 = arith.divf %110, %111 : vector<16x32xf32>
    %113 = arith.mulf %112, %100 : vector<16x32xf32>
    %cst_51 = arith.constant 1.000000e+00 : f32
    %114 = vector.broadcast %cst_51 : f32 to vector<16x32xf32>
    %115 = arith.subf %114, %112 : vector<16x32xf32>
    %116 = arith.mulf %115, %2 : vector<16x32xf32>
    %117 = arith.addf %113, %116 : vector<16x32xf32>
    %118 = arith.mulf %117, %117 : vector<16x32xf32>
    %cst_52 = arith.constant dense<0.000000e+00> : vector<16xf32>
    %119 = vector.multi_reduction <add>, %118, %cst_52 [1] : vector<16x32xf32> to vector<16xf32>
    %120 = vector.shape_cast %119 : vector<16xf32> to vector<16x1xf32>
    %cst_53 = arith.constant 3.200000e+01 : f32
    %121 = vector.broadcast %cst_53 : f32 to vector<16x1xf32>
    %122 = arith.divf %120, %121 : vector<16x1xf32>
    %cst_54 = arith.constant 9.99999997E-7 : f32
    %123 = vector.broadcast %cst_54 : f32 to vector<16x1xf32>
    %124 = arith.addf %122, %123 : vector<16x1xf32>
    %125 = math.rsqrt %124 : vector<16x1xf32>
    %126 = vector.broadcast %125 : vector<16x1xf32> to vector<16x32xf32>
    %127 = arith.mulf %117, %126 : vector<16x32xf32>
    %128 = vector.broadcast %11 : vector<1x32xf32> to vector<16x32xf32>
    %129 = arith.mulf %128, %127 : vector<16x32xf32>
    %130 = vector.shape_cast %129 : vector<16x32xf32> to vector<2x8x32xf32>
    %131 = arith.truncf %130 : vector<2x8x32xf32> to vector<2x8x32xbf16>
    "tpu.trace_start"() <{level = 10 : i32, message = "btd,bmd->btm"}> : () -> ()
    %cst_55 = arith.constant dense<0.000000e+00> : vector<2x8x16xf32>
    %132 = tpu.matmul %131, %73, %cst_55 {dimension_numbers = #tpu.dot_dimension_numbers<[2], [2], [1], [1], [0, 0, 0, 1, 1, 1], [0], [0]>} : vector<2x8x32xbf16>, vector<2x16x32xbf16>, vector<2x8x16xf32> -> vector<2x8x16xf32>
    %cst_56 = arith.constant 0.000000e+00 : f32
    "tpu.trace_stop"() : () -> ()
    %133 = vector.broadcast %cst_56 : f32 to vector<2x8x16xf32>
    %134 = arith.cmpf olt, %4, %133 : vector<2x8x16xf32>
    %cst_57 = arith.constant -3.40282347E+38 : f32
    %135 = vector.broadcast %cst_57 : f32 to vector<2x8x16xf32>
    %136 = arith.select %134, %135, %132 : vector<2x8x16xi1>, vector<2x8x16xf32>
    %c0_58 = arith.constant 0 : index
    %c0_59 = arith.constant 0 : index
    %c0_60 = arith.constant 0 : index
    %137 = vector.load %arg8[%c0_58, %c0_59, %c0_60] : memref<2x8x16xf32, #tpu.memory_space<vmem>>, vector<2x8x16xf32>
    tpu.vector_store %arg8[%c0_58, %c0_59, %c0_60], %136 {strides = array<i32>} : memref<2x8x16xf32, #tpu.memory_space<vmem>>, vector<2x8x16xf32>,
    return
  }
  func.func @transform_0(%arg0: i32) -> (i32, i32) {
    %c0_i32 = arith.constant 0 : i32
    %c0_i32_0 = arith.constant 0 : i32
    %c0_i32_1 = arith.constant 0 : i32
    return %c0_i32, %c0_i32_0 : i32, i32
  }
  func.func @transform_1(%arg0: i32) -> (i32, i32) {
    %c0_i32 = arith.constant 0 : i32
    %c0_i32_0 = arith.constant 0 : i32
    %c0_i32_1 = arith.constant 0 : i32
    return %c0_i32, %c0_i32_0 : i32, i32
  }
  func.func @transform_2(%arg0: i32) -> (i32, i32) {
    %c0_i32 = arith.constant 0 : i32
    %c0_i32_0 = arith.constant 0 : i32
    %c0_i32_1 = arith.constant 0 : i32
    return %c0_i32, %c0_i32_0 : i32, i32
  }
  func.func @transform_3(%arg0: i32) -> (i32, i32) {
    %c0_i32 = arith.constant 0 : i32
    %c0_i32_0 = arith.constant 0 : i32
    %c0_i32_1 = arith.constant 0 : i32
    return %c0_i32, %c0_i32_0 : i32, i32
  }
  func.func @transform_4(%arg0: i32) -> (i32, i32, i32) {
    %c0_i32 = arith.constant 0 : i32
    %c0_i32_0 = arith.constant 0 : i32
    %c0_i32_1 = arith.constant 0 : i32
    %c0_i32_2 = arith.constant 0 : i32
    return %c0_i32, %c0_i32_0, %c0_i32_1 : i32, i32, i32
  }
  func.func @transform_5(%arg0: i32) -> (i32, i32, i32) {
    %c0_i32 = arith.constant 0 : i32
    %c0_i32_0 = arith.constant 0 : i32
    %c0_i32_1 = arith.constant 0 : i32
    %c0_i32_2 = arith.constant 0 : i32
    return %c0_i32, %c0_i32_0, %c0_i32_1 : i32, i32, i32
  }
  func.func @transform_6(%arg0: i32) -> (i32, i32) {
    %c0_i32 = arith.constant 0 : i32
    %c0_i32_0 = arith.constant 0 : i32
    %c0_i32_1 = arith.constant 0 : i32
    return %c0_i32, %c0_i32_0 : i32, i32
  }
  func.func @transform_7(%arg0: i32) -> (i32, i32, i32) {
    %c0_i32 = arith.constant 0 : i32
    %c0_i32_0 = arith.constant 0 : i32
    %c0_i32_1 = arith.constant 0 : i32
    %c0_i32_2 = arith.constant 0 : i32
    return %c0_i32, %c0_i32_0, %c0_i32_1 : i32, i32, i32
  }
}

</mosaic_0001>

<bundles_post_ra>
// kernel: tpu_custom_call.1
= control target key start
LH: loop header
LB: loop body
LE: loop exit
PB: predicated region body
PF: predicated region fallthrough
CT: control target
= control target key end

     0   :  { %12 = vsyncpa [#allocation3], 0  ;;  %s1738_s0 = inlined_call_operand.hbm [shape: f32[16,32], index: 0, kind: input, shape index: {}]   ;;  %s1739_s1 = inlined_call_operand.hbm [shape: f32[16,32], index: 1, kind: input, shape index: {}]   ;;  %s1740_s2 = inlined_call_operand.hbm [shape: f32[16,32], index: 2, kind: input, shape index: {}]   ;;  %s1741_s3 = inlined_call_operand.hbm [shape: f32[8,32], index: 3, kind: input, shape index: {}]   ;;  %s1742_s4 = inlined_call_operand.hbm [shape: f32[2,8,16], index: 4, kind: input, shape index: {}]   ;;  %s1743_s5 = inlined_call_operand.hbm [shape: bf16[9,32,32], index: 5, kind: input, shape index: {}]   ;;  %s1744_s6 = inlined_call_operand.vmem [shape: f32[6,32], index: 6, kind: input, shape index: {}]   ;;  %s1745_s7 = inlined_call_operand.hbm [shape: f32[2,8,16], index: 7, kind: output, shape index: {}]  }
   0x1   :  { %13 = vsyncpa [#allocation6], 0 }
   0x2   :  { %14 = vsyncpa [#allocation9], 0 }
   0x3   :  { %15 = vsyncpa [#allocation12], 0 }
   0x4   :  { %16 = vsyncpa [#allocation4], 0  ;;  %s1523_s24 = smov [#allocation5]   ;;  %s1524_s26 = smov [#allocation8]  }
   0x5   :  { %s34_s25 = sshll.u32 %s1523_s24, 4  ;;  %s59_s27 = sshll.u32 %s1524_s26, 4  ;;  %s35_s25 = int_to_ptr.vmem [resolvable:$true] %s34_s25  ;;  %s60_s27 = int_to_ptr.vmem [resolvable:$true] %s59_s27 }
   0x6   :  { %s1381_s28 = scalar_lea.vmem %s35_s25, 256  ;;  %p1386_p1 = scmp.lt.s32.totalorder %s35_s25, %s35_s25 }
   0x7   :  { %p1382_p0 = scmp.ne.s32.totalorder %s35_s25, %s1381_s28  ;;  %p1387_p2 = scmp.lt.s32.totalorder %s1381_s28, %s1381_s28 }
   0x9   :  { %p1388_p3 = por %p1387_p2, %p1386_p1 }
   0xb   :  { %p1389_p4 = pnand %p1388_p3, %p1382_p0 }
   0xd   :  { %1392 = shalt.err (!%p1389_p4)
}
   0xe   :  { %s1525_s29 = smov 128   ;;  %s1526_s30 = smov 8  }
   0xf   :  { %40 = dma.hbm_to_vmem [thread:$0]  %s1739_s1, 256, %s35_s25, [#allocation6], %s1525_s29, %s1525_s29, %s1526_s30  }
  0x10   :  { %s1401_s10 = scalar_lea.vmem %s60_s27, 128  ;;  %p1406_p6 = scmp.lt.s32.totalorder %s60_s27, %s60_s27 }
  0x11   :  { %p1402_p5 = scmp.ne.s32.totalorder %s60_s27, %s1401_s10  ;;  %p1407_p7 = scmp.lt.s32.totalorder %s1401_s10, %s1401_s10 }
  0x13   :  { %p1408_p8 = por %p1407_p7, %p1406_p6 }
  0x15   :  { %p1409_p9 = pnand %p1408_p8, %p1402_p5 }
  0x17   :  { %1412 = shalt.err (!%p1409_p9)
}
  0x18   :  { %62 = dma.hbm_to_vmem [thread:$0]  %s1741_s3, 128, %s60_s27, [#allocation9]  }
  0x19   :  { %s1527_s13 = smov [#allocation2]   ;;  %s1528_s15 = smov [#allocation7]  }
  0x1a   :  { %s22_s14 = sshll.u32 %s1527_s13, 4  ;;  %s46_s16 = sshll.u32 %s1528_s15, 4  ;;  %s23_s14 = int_to_ptr.vmem [resolvable:$true] %s22_s14  ;;  %s47_s16 = int_to_ptr.vmem [resolvable:$true] %s46_s16 }
  0x1b   :  { %s1421_s17 = scalar_lea.vmem %s23_s14, 256  ;;  %p1426_p11 = scmp.lt.s32.totalorder %s23_s14, %s23_s14 }
  0x1c   :  { %p1422_p10 = scmp.ne.s32.totalorder %s23_s14, %s1421_s17  ;;  %p1427_p12 = scmp.lt.s32.totalorder %s1421_s17, %s1421_s17 }
  0x1e   :  { %p1428_p13 = por %p1427_p12, %p1426_p11 }
  0x20   :  { %p1429_p0 = pnand %p1428_p13, %p1422_p10 }
  0x22   :  { %1432 = shalt.err (!%p1429_p0)
}
  0x23   :  { %28 = dma.hbm_to_vmem [thread:$0]  %s1738_s0, 256, %s23_s14, [#allocation3], %s1525_s29, %s1525_s29, %s1526_s30  }
  0x24   :  { %s1441_s3 = scalar_lea.vmem %s47_s16, 256  ;;  %p1446_p2 = scmp.lt.s32.totalorder %s47_s16, %s47_s16 }
  0x25   :  { %p1442_p1 = scmp.ne.s32.totalorder %s47_s16, %s1441_s3  ;;  %p1447_p3 = scmp.lt.s32.totalorder %s1441_s3, %s1441_s3 }
  0x27   :  { %p1448_p4 = por %p1447_p3, %p1446_p2 }
  0x29   :  { %p1449_p5 = pnand %p1448_p4, %p1442_p1 }
  0x2b   :  { %1452 = shalt.err (!%p1449_p5)
}
  0x2c   :  { %52 = dma.hbm_to_vmem [thread:$0]  %s1740_s2, 256, %s47_s16, [#allocation6], %s1525_s29, %s1525_s29, %s1526_s30  }
  0x2d   :  { %s1529_s21 = smov [#allocation10]   ;;  %s1530_s23 = smov [#allocation11]  }
  0x2e   :  { %s68_s22 = sshll.u32 %s1529_s21, 4  ;;  %s80_s24 = sshll.u32 %s1530_s23, 4  ;;  %s69_s22 = int_to_ptr.vmem [resolvable:$true] %s68_s22  ;;  %s81_s24 = int_to_ptr.vmem [resolvable:$true] %s80_s24 }
  0x2f   :  { %s1461_s0 = scalar_lea.vmem %s69_s22, 256  ;;  %p1466_p7 = scmp.lt.s32.totalorder %s69_s22, %s69_s22 }
  0x30   :  { %p1462_p6 = scmp.ne.s32.totalorder %s69_s22, %s1461_s0  ;;  %p1467_p8 = scmp.lt.s32.totalorder %s1461_s0, %s1461_s0 }
  0x32   :  { %p1468_p9 = por %p1467_p8, %p1466_p7 }
  0x34   :  { %p1469_p10 = pnand %p1468_p9, %p1462_p6 }
  0x36   :  { %1472 = shalt.err (!%p1469_p10)
}
  0x37   :  { %74 = dma.hbm_to_vmem [thread:$0]  %s1742_s4, 256, %s69_s22, [#allocation9], %s1525_s29, %s1525_s29, %s1526_s30  }
  0x38   :  { %s1481_s2 = scalar_lea.vmem %s81_s24, 2304  ;;  %p1486_p12 = scmp.lt.s32.totalorder %s81_s24, %s81_s24 }
  0x39   :  { %p1482_p11 = scmp.ne.s32.totalorder %s81_s24, %s1481_s2  ;;  %p1487_p13 = scmp.lt.s32.totalorder %s1481_s2, %s1481_s2 }
  0x3b   :  { %p1488_p0 = por %p1487_p13, %p1486_p12 }
  0x3d   :  { %p1489_p1 = pnand %p1488_p0, %p1482_p11 }
  0x3f   :  { %1492 = shalt.err (!%p1489_p1)
}
  0x40   :  { %s1531_s27 = smov 64   ;;  %s1532_s28 = smov 4  }
  0x41   :  { %86 = dma.hbm_to_vmem [thread:$0]  %s1743_s5, 2304, %s81_s24, [#allocation12], %s1531_s27, %s1531_s27, %s1532_s28  }
  0x42   :  { %1513 = dma.done.wait [#allocation3], 256  }
  0x43   :  { %1514 = vsyncadd [#allocation3], 4294967040 }
  0x44   :  { %1515 = dma.done.wait [#allocation6], 512  }
  0x45   :  { %1516 = vsyncadd [#allocation6], 4294966784 }
  0x46   :  { %1517 = dma.done.wait [#allocation9], 384  }
  0x47   :  { %1518 = vsyncadd [#allocation9], 4294966912 }
  0x48   :  { %1519 = dma.done.wait [#allocation12], 2304  }
  0x49   :  { %1520 = vsyncadd [#allocation12], 4294964992  ;;  %v1533_v0 = vmov 0.0   ;;  %vm1534_vm0 = vmmov 0   ;;  %v1323_v1 = vld [vmem:[#allocation11 + $0x8] sm:$0xff]   ;;  %v1324_v2 = vld [vmem:[#allocation11] sm:$0xff]   ;;  %v163_v9 = vlaneseq }
  0x4a   :  { %1202 = vmatprep.subr.bf16.mxu0 %v1533_v0  ;;  %1206 = vmatprep.mubr.msk.bf16.mxu0 %vm1534_vm0, %v1533_v0  ;;  %v108_v3 = vld [vmem:[#allocation2] sm:$0xff]  ;;  %v109_v4 = vld [vmem:[#allocation2 + $0x8] sm:$0xff]  ;;  %vm179_vm1 = vcmask 261120   ;;  %v1326_v7 = vld [vmem:[#allocation11 + $0x10] sm:$0xff]   ;;  %vm737_vm2 = vcmask 130048  }
  0x4b   :  { %1210 = vmatprep.subr.bf16.mxu1 %v1533_v0  ;;  %1214 = vmatprep.mubr.msk.bf16.mxu1 %vm1534_vm0, %v1533_v0  ;;  %v162_v5 = vpack.c.bf16 %v109_v4, %v108_v3  ;;  %v1325_v6 = vld [vmem:[#allocation11 + $0x18] sm:$0xff]   ;;  %v1620_v10 = vshrl.u32 %v163_v9, 7  ;;  %v1328_v23 = vld [vmem:[#allocation11 + $0x30] sm:$0xff]   ;;  %v1329_v24 = vld [vmem:[#allocation11 + $0x28] sm:$0xff]  }
  0x4c   :  { %1203 = vmatpush3.bf16.msra.mxu0 %v1323_v1  ;;  %1211 = vmatpush3.bf16.msra.mxu1 %v1325_v6  ;;  %v1327_v8 = vld [vmem:[#allocation11 + $0x38] sm:$0xff]   ;;  %v110_v25 = vld [vmem:[#allocation5] sm:$0xff]  ;;  %v111_v26 = vld [vmem:[#allocation5 + $0x8] sm:$0xff] }
  0x4d   :  { %1204 = vmatprep.subr.bf16.mxu0 %v1533_v0  ;;  %1212 = vmatprep.subr.bf16.mxu1 %v1533_v0  ;;  %v165_v11 = vsub.s32 0, %v1620_v10  ;;  %v1626_v12 = vld [vmem:[%s1744_s6] sm:$0x3f]  ;;  %v288_v27 = vpack.c.bf16 %v111_v26, %v110_v25  ;;  %v1330_v28 = vld [vmem:[#allocation11 + $0x20] sm:$0xff]   ;;  %v229_v29 = vsub.s32 1, %v1620_v10  ;;  %v403_v42 = vsub.s32 2, %v1620_v10 }
  0x4e   :  { %v1331_v9 = vld [vmem:[#allocation11 + $0x78] sm:$0xff]   ;;  %s1535_s6 = smov [#allocation13]  }
  0x4f   :  { %v166_v13 = vrot.slane %v1626_v12, %v165_v11  ;;  %v230_v31 = vrot.slane %v1626_v12, %v229_v29  ;;  %v404_v43 = vrot.slane %v1626_v12, %v403_v42  ;;  %v1332_v11 = vld [vmem:[#allocation11 + $0x88] sm:$0xff]   ;;  %s1107_s10 = sshll.u32 %s1535_s6, 4  ;;  %s1108_s10 = int_to_ptr.vmem [resolvable:$true] %s1107_s10 }
  0x50   :  { %1205 = vmatpush3.bf16.msra.mxu0 %v1324_v2  ;;  %1213 = vmatpush3.bf16.msra.mxu1 %v1326_v7  ;;  %s1493_s11 = scalar_lea.vmem %s1108_s10, 256  ;;  %p1498_p3 = scmp.lt.s32.totalorder %s1108_s10, %s1108_s10 }
  0x51   :  { %1218 = vmatprep.subr.bf16.mxu0 %v1533_v0  ;;  %1226 = vmatprep.subr.bf16.mxu1 %v1533_v0  ;;  %p1494_p2 = scmp.ne.s32.totalorder %s1108_s10, %s1493_s11  ;;  %p1499_p4 = scmp.lt.s32.totalorder %s1493_s11, %s1493_s11 }
  0x53   :  { %1207 = vmatmul.mubr.msk.bf16.vlgmr.msra.gmra.mxu0 %vm179_vm1, %v162_v5  ;;  %p1500_p5 = por %p1499_p4, %p1498_p3 }
  0x54   :  { %1222 = vmatprep.mubr.msk.bf16.mxu0 %vm1534_vm0, %v1533_v0  ;;  %1219 = vmatpush3.bf16.msra.mxu0 %v1327_v8 }
  0x55   :  { %1220 = vmatprep.subr.bf16.mxu0 %v1533_v0  ;;  %p1501_p6 = pnand %p1500_p5, %p1494_p2 }
  0x58   :  { %1221 = vmatpush3.bf16.msra.mxu0 %v1328_v23 }
  0x59   :  { %1234 = vmatprep.subr.bf16.mxu0 %v1331_v9 }
  0x5b   :  { %1223 = vmatmul.mubr.msk.bf16.vlgmr.msra.gmra.mxu0 %vm179_vm1, %v288_v27 }
  0x5c   :  { %1235 = vmatpush3.bf16.msra.mxu0 %v1331_v9 }
 0x113   :  { %v217_v14 = vpop.f32.mrf.mxu0 }
 0x114   :  { %v218_v16 = vadd.f32 %v217_v14, %v166_v13  ;;  %v1334_v14 = vld [vmem:[#allocation11 + $0x80] sm:$0xff]  }
 0x115   :  { %v1208_v15 = vpop.f32.mrf.mxu0 }
 0x116   :  { %v224_v20 = vmax.f32 %v218_v16, 0.0 }
 0x117   :  { %v220_v17 = vpop.f32.mrf.mxu0 }
 0x118   :  { %v221_v18 = vadd.f32 %v220_v17, %v166_v13  ;;  %v1333_v13 = vld [vmem:[#allocation11 + $0x70] sm:$0xff]  }
 0x119   :  { %v1209_v19 = vpop.f32.mrf.mxu0  ;;  %1236 = vmatprep.subr.bf16.mxu0 %v1333_v13 }
 0x11a   :  { %v225_v21 = vmax.f32 %v221_v18, 0.0  ;;  %1237 = vmatpush3.bf16.msra.mxu0 %v1333_v13 }
 0x11b   :  { %v338_v38 = vpop.f32.mrf.mxu0  ;;  %1250 = vmatprep.subr.bf16.mxu0 %v1533_v0 }
 0x11c   :  { %v226_v22 = vpack.c.bf16 %v225_v21, %v224_v20  ;;  %v446_v21 = vsub.s32 4, %v1620_v10 }
 0x11d   :  { %v1224_v39 = vpop.f32.mrf.mxu0 }
 0x11e   :  { %1215 = vmatmul.mubr.msk.bf16.vlgmr.msra.gmra.mxu1 %vm179_vm1, %v226_v22  ;;  %v447_v22 = vrot.slane %v1626_v12, %v446_v21 }
 0x11f   :  { %1230 = vmatprep.mubr.msk.bf16.mxu1 %vm1534_vm0, %v1533_v0  ;;  %1227 = vmatpush3.bf16.msra.mxu1 %v1329_v24  ;;  %v341_v40 = vpop.f32.mrf.mxu0 }
 0x120   :  { %1228 = vmatprep.subr.bf16.mxu1 %v1533_v0 }
 0x121   :  { %v1225_v41 = vpop.f32.mrf.mxu0 }
 0x123   :  { %1229 = vmatpush3.bf16.msra.mxu1 %v1330_v28 }
 0x124   :  { %1242 = vmatprep.subr.bf16.mxu1 %v1332_v11 }
 0x1de   :  { %v280_v30 = vpop.f32.mrf.mxu1 }
 0x1df   :  { %v281_v34 = vadd.f32 %v280_v30, %v230_v31 }
 0x1e0   :  { %v1216_v32 = vpop.f32.mrf.mxu1 }
 0x1e2   :  { %v283_v33 = vpop.f32.mrf.mxu1 }
 0x1e3   :  { %v284_v35 = vadd.f32 %v283_v33, %v230_v31  ;;  %v1335_v31 = vld [vmem:[#allocation11 + $0x68] sm:$0xff]   ;;  %v1336_v33 = vld [vmem:[#allocation11 + $0x60] sm:$0xff]  }
 0x1e4   :  { %v1217_v36 = vpop.f32.mrf.mxu1 }
 0x1e5   :  { %v287_v37 = vpack.c.bf16 %v284_v35, %v281_v34 }
 0x1e7   :  { %1231 = vmatmul.mubr.msk.bf16.vlgmr.msra.gmra.mxu1 %vm179_vm1, %v287_v37 }
 0x1e8   :  { %1243 = vmatpush3.bf16.msra.mxu1 %v1332_v11 }
 0x1e9   :  { %1244 = vmatprep.subr.bf16.mxu1 %v1334_v14 }
 0x1ec   :  { %1245 = vmatpush3.bf16.msra.mxu1 %v1334_v14 }
 0x1ed   :  { %1258 = vmatprep.subr.bf16.mxu1 %v1533_v0 }
 0x2a7   :  { %v394_v44 = vpop.f32.mrf.mxu1 }
 0x2a8   :  { %v395_v45 = vadd.f32 %v394_v44, %v338_v38 }
 0x2a9   :  { %v1232_v46 = vpop.f32.mrf.mxu1 }
 0x2aa   :  { %v405_v47 = vadd.f32 %v404_v43, %v395_v45 }
 0x2ab   :  { %v397_v48 = vpop.f32.mrf.mxu1 }
 0x2ac   :  { %v1134_v49 = vmul.f32 -1.442695, %v405_v47  ;;  %v398_v50 = vadd.f32 %v397_v48, %v341_v40 }
 0x2ad   :  { %v1233_v51 = vpop.f32.mrf.mxu1 }
 0x2ae   :  { %1341 = vpow2.f32 %v1134_v49  ;;  %v406_v52 = vadd.f32 %v404_v43, %v398_v50 }
 0x2b0   :  { %v1135_v53 = vmul.f32 -1.442695, %v406_v52 }
 0x2b2   :  { %1343 = vpow2.f32 %v1135_v53 }
 0x2bb   :  { %v1342_v54 = vpop.eup %1341 }
 0x2bc   :  { %v413_v55 = vadd.f32 1.0, %v1342_v54 }
 0x2be   :  { %1345 = vrcp.f32 %v413_v55 }
 0x2bf   :  { %v1344_v56 = vpop.eup %1343 }
 0x2c0   :  { %v414_v57 = vadd.f32 1.0, %v1344_v56 }
 0x2c2   :  { %1347 = vrcp.f32 %v414_v57 }
 0x2cb   :  { %v1346_v58 = vpop.eup %1345 }
 0x2cc   :  { %v421_v59 = vsub.f32 1.0, %v1346_v58  ;;  %v419_v60 = vmul.f32 %v1346_v58, %v281_v34  ;;  %v1659_v34 = vld [vmem:[#allocation7] sm:$0xff] }
 0x2ce   :  { %v423_v61 = vmul.f32 %v421_v59, %v110_v25  ;;  %v114_v25 = vld [vmem:[#allocation8] sm:$0xff] }
 0x2cf   :  { %v1348_v62 = vpop.eup %1347 }
 0x2d0   :  { %v425_v63 = vadd.f32 %v423_v61, %v419_v60  ;;  %v422_v1 = vsub.f32 1.0, %v1348_v62  ;;  %v420_v3 = vmul.f32 %v1348_v62, %v284_v35  ;;  %v1661_v35 = vld [vmem:[#allocation7 + $0x8] sm:$0xff]  ;;  %v1687_v60 = vld [vmem:[#allocation10] sm:$0xff] }
 0x2d1   :  { %v1668_v36 = vpack.c.bf16 %v1661_v35, %v1659_v34  ;;  %vm1096_vm3 = vcmp.lt.f32.partialorder %v1687_v60, 0.0 }
 0x2d2   :  { %v427_v2 = vmul.f32 %v425_v63, %v425_v63  ;;  %v424_v4 = vmul.f32 %v422_v1, %v111_v26 }
 0x2d4   :  { %v429_v5 = vsel %vm179_vm1, %v427_v2, 0.0  ;;  %v426_v6 = vadd.f32 %v424_v4, %v420_v3  ;;  %v1689_v2 = vld [vmem:[#allocation10 + $0x8] sm:$0xff] }
 0x2d5   :  { %430 = vadd.xlane.f32.xlu0 %v429_v5  ;;  %vm1097_vm4 = vcmp.lt.f32.partialorder %v1689_v2, 0.0 }
 0x2d6   :  { %v428_v7 = vmul.f32 %v426_v6, %v426_v6 }
 0x2d8   :  { %v432_v8 = vsel %vm179_vm1, %v428_v7, 0.0 }
 0x2d9   :  { %433 = vadd.xlane.f32.xlu0 %v432_v8 }
 0x35e   :  { %v431_v15 = vpop.xlane.xlu0 %430 }
 0x35f   :  { %v436_v16 = vmul.f32 0.03125, %v431_v15 }
 0x361   :  { %v438_v17 = vadd.f32 1e-06, %v436_v16 }
 0x362   :  { %v434_v18 = vpop.xlane.xlu0 %433 }
 0x363   :  { %1349 = vrsqrt.f32 %v438_v17  ;;  %v437_v19 = vmul.f32 0.03125, %v434_v18 }
 0x365   :  { %v439_v20 = vadd.f32 1e-06, %v437_v19 }
 0x367   :  { %1351 = vrsqrt.f32 %v439_v20 }
 0x370   :  { %v1350_v23 = vpop.eup %1349 }
 0x371   :  { %v442_v24 = vmul.f32 %v1350_v23, %v425_v63 }
 0x373   :  { %v448_v26 = vmul.f32 %v447_v22, %v442_v24 }
 0x374   :  { %v1352_v27 = vpop.eup %1351 }
 0x375   :  { %v443_v28 = vmul.f32 %v1352_v27, %v426_v6  ;;  %v1645_v29 = vpack.c.bf16 %v448_v26, %v114_v25  ;;  %v1337_v26 = vld [vmem:[#allocation11 + $0x58] sm:$0xff]  }
 0x377   :  { %v449_v30 = vmul.f32 %v447_v22, %v443_v28  ;;  %1238 = vmatprep.mubr.msk.bf16.mxu0 %vm179_vm1, %v1645_v29  ;;  %1246 = vmatprep.mubr.msk.bf16.mxu1 %vm179_vm1, %v1645_v29 }
 0x379   :  { %v1651_v32 = vpack.c.bf16 %v449_v30, %v114_v25 }
 0x37b   :  { %1239 = vmatmul.mubr.msk.bf16.vlgmr.msra.gmra.mxu0 %vm179_vm1, %v1651_v32  ;;  %1247 = vmatmul.mubr.msk.bf16.vlgmr.msra.gmra.mxu1 %vm179_vm1, %v1651_v32 }
 0x37c   :  { %1251 = vmatpush3.bf16.msra.mxu0 %v1335_v31  ;;  %1254 = vmatprep.mubr.msk.bf16.mxu0 %vm1534_vm0, %v1533_v0  ;;  %v1338_v31 = vld [vmem:[#allocation11 + $0x50] sm:$0xff]  }
 0x37d   :  { %1252 = vmatprep.subr.bf16.mxu0 %v1533_v0  ;;  %1260 = vmatprep.mubr.msk.bf16.mxu1 %vm1534_vm0, %v1533_v0 }
 0x380   :  { %1253 = vmatpush3.bf16.msra.mxu0 %v1336_v33  ;;  %v1339_v33 = vld [vmem:[#allocation11 + $0x48] sm:$0xff]  }
 0x381   :  { %1264 = vmatprep.subr.bf16.mxu0 %v1533_v0 }
 0x383   :  { %1255 = vmatmul.mubr.msk.bf16.vlgmr.msra.gmra.mxu0 %vm179_vm1, %v1668_v36 }
 0x384   :  { %1266 = vmatprep.mubr.msk.bf16.mxu0 %vm1534_vm0, %v1533_v0 }
 0x43b   :  { %v1240_v37 = vpop.f32.mrf.mxu0  ;;  %v1248_v38 = vpop.f32.mrf.mxu1 }
 0x43d   :  { %v504_v39 = vpop.f32.mrf.mxu0  ;;  %v565_v41 = vpop.f32.mrf.mxu1 }
 0x43f   :  { %v1241_v40 = vpop.f32.mrf.mxu0  ;;  %v1249_v47 = vpop.f32.mrf.mxu1 }
 0x440   :  { %v640_v42 = vpack.c.bf16 %v1241_v40, %v1240_v37  ;;  %v763_v54 = vpack.c.bf16 %v1249_v47, %v1248_v38  ;;  %v465_v38 = vsel %vm179_vm1, %v1645_v29, 0  ;;  %v468_v29 = vsel %vm179_vm1, %v1651_v32, 0 }
 0x441   :  { %v507_v43 = vpop.f32.mrf.mxu0  ;;  %v568_v51 = vpop.f32.mrf.mxu1 }
 0x442   :  { %v691_v44 = vsel %vm179_vm1, %v640_v42, 0  ;;  %v639_v45 = vpack.c.bf16 %v507_v43, %v504_v39  ;;  %v762_v56 = vpack.c.bf16 %v568_v51, %v565_v41  ;;  %v1340_v39 = vld [vmem:[#allocation11 + $0x40] sm:$0xff]  }
 0x443   :  { %v630_v46 = vpop.f32.mrf.mxu0  ;;  %1265 = vmatpush3.bf16.xpose.msra.mxu0 %v691_v44 }
 0x444   :  { %v645_v48 = vsel %vm179_vm1, %v639_v45, 0  ;;  %1276 = vmatprep.subr.bf16.mxu0 %v1533_v0  ;;  %v637_v52 = vpack.c.bf16 %v630_v46, %v630_v46 }
 0x445   :  { %v1256_v49 = vpop.f32.mrf.mxu0  ;;  %1259 = vmatpush3.bf16.xpose.msra.mxu1 %v645_v48 }
 0x446   :  { %1270 = vmatprep.subr.bf16.mxu1 %v1533_v0 }
 0x447   :  { %v633_v50 = vpop.f32.mrf.mxu0 }
 0x448   :  { %v638_v53 = vpack.c.bf16 %v633_v50, %v633_v50 }
 0x449   :  { %v1257_v55 = vpop.f32.mrf.mxu0 }
 0x44a   :  { %1267 = vmatmul.mubr.msk.bf16.vlgmr.msra.gmra.mxu0 %vm179_vm1, %v638_v53 }
 0x44b   :  { %1277 = vmatpush3.bf16.msra.mxu0 %v763_v54  ;;  %1278 = vmatprep.mubr.msk.bf16.mxu0 %vm1534_vm0, %v1533_v0 }
 0x44c   :  { %1261 = vmatmul.mubr.msk.bf16.vlgmr.msra.gmra.mxu1 %vm179_vm1, %v637_v52  ;;  %1290 = vmatprep.subr.bf16.mxu0 %v1533_v0  ;;  %v962_v52 = vsub.s32 3, %v1620_v10 }
 0x44d   :  { %1271 = vmatpush3.bf16.msra.mxu1 %v762_v56  ;;  %1272 = vmatprep.mubr.msk.bf16.mxu1 %vm1534_vm0, %v1533_v0 }
 0x44e   :  { %1282 = vmatprep.subr.bf16.mxu1 %v1533_v0  ;;  %v963_v53 = vrot.slane %v1626_v12, %v962_v52 }
 0x50a   :  { %v727_v57 = vpop.f32.mrf.mxu0 }
 0x50b   :  { %v734_v61 = vmul.f32 0.17677669, %v727_v57 }
 0x50c   :  { %v681_v58 = vpop.f32.mrf.mxu1  ;;  %v1268_v59 = vpop.f32.mrf.mxu0 }
 0x50d   :  { %v733_v62 = vmul.f32 0.17677669, %v681_v58  ;;  %v736_v7 = vadd.f32 %v734_v61, %v1689_v2 }
 0x50e   :  { %v1262_v63 = vpop.f32.mrf.mxu1  ;;  %v730_v1 = vpop.f32.mrf.mxu0 }
 0x50f   :  { %v735_v3 = vadd.f32 %v733_v62, %v1687_v60  ;;  %v741_v9 = vsel %vm737_vm2, %v736_v7, -inf }
 0x510   :  { %v684_v4 = vpop.f32.mrf.mxu1  ;;  %v1269_v5 = vpop.f32.mrf.mxu0 }
 0x511   :  { %v738_v6 = vsel %vm737_vm2, %v735_v3, -inf }
 0x512   :  { %739 = vmax.xlane.f32.xlu1 %v738_v6  ;;  %v1263_v8 = vpop.f32.mrf.mxu1 }
 0x516   :  { %742 = vmax.xlane.f32.xlu1 %v741_v9 }
 0x59b   :  { %v740_v11 = vpop.xlane.xlu1 %739 }
 0x59c   :  { %v744_v13 = vsub.f32 %v735_v3, %v740_v11 }
 0x59e   :  { %v746_v14 = vmul.f32 1.442695, %v744_v13 }
 0x59f   :  { %v743_v15 = vpop.xlane.xlu1 %742 }
 0x5a0   :  { %1353 = vpow2.f32 %v746_v14  ;;  %v745_v16 = vsub.f32 %v736_v7, %v743_v15 }
 0x5a2   :  { %v748_v17 = vmul.f32 1.442695, %v745_v16 }
 0x5a4   :  { %1355 = vpow2.f32 %v748_v17 }
 0x5ad   :  { %v1354_v18 = vpop.eup %1353 }
 0x5ae   :  { %v750_v19 = vsel %vm737_vm2, %v1354_v18, 0.0 }
 0x5af   :  { %751 = vadd.xlane.f32.xlu0 %v750_v19 }
 0x5b1   :  { %v1356_v20 = vpop.eup %1355 }
 0x5b2   :  { %v753_v21 = vsel %vm737_vm2, %v1356_v20, 0.0 }
 0x5b3   :  { %754 = vadd.xlane.f32.xlu1 %v753_v21 }
 0x638   :  { %v752_v22 = vpop.xlane.xlu0 %751 }
 0x639   :  { %1357 = vrcp.f32 %v752_v22 }
 0x63c   :  { %v755_v23 = vpop.xlane.xlu1 %754 }
 0x63d   :  { %1359 = vrcp.f32 %v755_v23 }
 0x646   :  { %v1358_v24 = vpop.eup %1357 }
 0x647   :  { %v758_v25 = vmul.f32 %v1358_v24, %v1354_v18 }
 0x649   :  { %v760_v27 = vpack.c.bf16 %v758_v25, %v758_v25 }
 0x64a   :  { %v1360_v28 = vpop.eup %1359 }
 0x64b   :  { %1273 = vmatmul.mubr.msk.bf16.vlgmr.msra.gmra.mxu1 %vm737_vm2, %v760_v27  ;;  %v759_v30 = vmul.f32 %v1360_v28, %v1356_v20 }
 0x64c   :  { %1283 = vmatpush3.bf16.msra.mxu1 %v1337_v26  ;;  %1286 = vmatprep.mubr.msk.bf16.mxu1 %vm1534_vm0, %v1533_v0  ;;  %v1004_v26 = vsub.s32 5, %v1620_v10 }
 0x64d   :  { %1284 = vmatprep.subr.bf16.mxu1 %v1533_v0  ;;  %v761_v37 = vpack.c.bf16 %v759_v30, %v759_v30 }
 0x64f   :  { %1279 = vmatmul.mubr.msk.bf16.vlgmr.msra.gmra.mxu0 %vm737_vm2, %v761_v37 }
 0x650   :  { %1285 = vmatpush3.bf16.msra.mxu1 %v1338_v31  ;;  %1291 = vmatpush3.bf16.msra.mxu0 %v1339_v33 }
 0x651   :  { %1298 = vmatprep.subr.bf16.mxu1 %v1533_v0  ;;  %1292 = vmatprep.subr.bf16.mxu0 %v1533_v0 }
 0x652   :  { %1294 = vmatprep.mubr.msk.bf16.mxu0 %vm1534_vm0, %v1533_v0 }
 0x653   :  { %1287 = vmatmul.mubr.msk.bf16.vlgmr.msra.gmra.mxu1 %vm179_vm1, %v1668_v36 }
 0x654   :  { %1299 = vmatpush3.bf16.xpose.msra.mxu1 %v465_v38  ;;  %1300 = vmatprep.mubr.msk.bf16.mxu1 %vm1534_vm0, %v1533_v0 }
 0x655   :  { %1293 = vmatpush3.bf16.msra.mxu0 %v1340_v39 }
 0x656   :  { %1304 = vmatprep.subr.bf16.mxu0 %v1533_v0 }
 0x70b   :  { %v801_v40 = vpop.f32.mrf.mxu1 }
 0x70d   :  { %v1274_v41 = vpop.f32.mrf.mxu1 }
 0x70f   :  { %v804_v42 = vpop.f32.mrf.mxu1  ;;  %v844_v43 = vpop.f32.mrf.mxu0 }
 0x710   :  { %v850_v44 = vpack.c.bf16 %v844_v43, %v801_v40 }
 0x711   :  { %v1275_v45 = vpop.f32.mrf.mxu1  ;;  %v1280_v46 = vpop.f32.mrf.mxu0 }
 0x712   :  { %1295 = vmatmul.mubr.msk.bf16.vlgmr.msra.gmra.mxu0 %vm179_vm1, %v850_v44 }
 0x713   :  { %1305 = vmatpush3.bf16.xpose.msra.mxu0 %v468_v29  ;;  %v847_v36 = vpop.f32.mrf.mxu0  ;;  %v897_v47 = vpop.f32.mrf.mxu1  ;;  %1306 = vmatprep.mubr.msk.bf16.mxu0 %vm1534_vm0, %v1533_v0 }
 0x715   :  { %v1281_v48 = vpop.f32.mrf.mxu0  ;;  %v1288_v49 = vpop.f32.mrf.mxu1 }
 0x717   :  { %v900_v50 = vpop.f32.mrf.mxu1 }
 0x719   :  { %v1289_v51 = vpop.f32.mrf.mxu1 }
 0x7d2   :  { %v953_v54 = vpop.f32.mrf.mxu0 }
 0x7d3   :  { %v954_v55 = vadd.f32 %v953_v54, %v897_v47 }
 0x7d4   :  { %v1296_v56 = vpop.f32.mrf.mxu0 }
 0x7d5   :  { %v964_v57 = vadd.f32 %v963_v53, %v954_v55 }
 0x7d6   :  { %v956_v58 = vpop.f32.mrf.mxu0 }
 0x7d7   :  { %v1157_v32 = vmul.f32 -1.442695, %v964_v57  ;;  %v957_v59 = vadd.f32 %v956_v58, %v900_v50 }
 0x7d8   :  { %v1297_v61 = vpop.f32.mrf.mxu0 }
 0x7d9   :  { %1361 = vpow2.f32 %v1157_v32  ;;  %v965_v62 = vadd.f32 %v963_v53, %v957_v59 }
 0x7db   :  { %v1158_v63 = vmul.f32 -1.442695, %v965_v62 }
 0x7dd   :  { %1363 = vpow2.f32 %v1158_v63 }
 0x7e6   :  { %v1362_v0 = vpop.eup %1361 }
 0x7e7   :  { %v972_v1 = vadd.f32 1.0, %v1362_v0 }
 0x7e9   :  { %1365 = vrcp.f32 %v972_v1 }
 0x7ea   :  { %v1364_v3 = vpop.eup %1363 }
 0x7eb   :  { %v973_v4 = vadd.f32 1.0, %v1364_v3 }
 0x7ed   :  { %1367 = vrcp.f32 %v973_v4 }
 0x7f6   :  { %v1366_v5 = vpop.eup %1365 }
 0x7f7   :  { %v980_v6 = vsub.f32 1.0, %v1366_v5  ;;  %v978_v7 = vmul.f32 %v1366_v5, %v801_v40 }
 0x7f9   :  { %v982_v8 = vmul.f32 %v980_v6, %v1659_v34 }
 0x7fa   :  { %v1368_v9 = vpop.eup %1367 }
 0x7fb   :  { %v984_v11 = vadd.f32 %v982_v8, %v978_v7  ;;  %v981_v13 = vsub.f32 1.0, %v1368_v9  ;;  %v979_v15 = vmul.f32 %v1368_v9, %v844_v43 }
 0x7fd   :  { %v986_v14 = vmul.f32 %v984_v11, %v984_v11  ;;  %v983_v16 = vmul.f32 %v981_v13, %v1661_v35  ;;  %v1005_v35 = vrot.slane %v1626_v12, %v1004_v26 }
 0x7ff   :  { %v988_v17 = vsel %vm179_vm1, %v986_v14, 0.0  ;;  %v985_v18 = vadd.f32 %v983_v16, %v979_v15 }
 0x800   :  { %989 = vadd.xlane.f32.xlu0 %v988_v17 }
 0x801   :  { %v987_v19 = vmul.f32 %v985_v18, %v985_v18 }
 0x803   :  { %v991_v20 = vsel %vm179_vm1, %v987_v19, 0.0 }
 0x804   :  { %992 = vadd.xlane.f32.xlu1 %v991_v20 }
 0x889   :  { %v990_v21 = vpop.xlane.xlu0 %989 }
 0x88a   :  { %v994_v22 = vmul.f32 0.03125, %v990_v21 }
 0x88c   :  { %v996_v23 = vadd.f32 1e-06, %v994_v22 }
 0x88d   :  { %v993_v24 = vpop.xlane.xlu1 %992 }
 0x88e   :  { %1369 = vrsqrt.f32 %v996_v23  ;;  %v995_v34 = vmul.f32 0.03125, %v993_v24 }
 0x890   :  { %v997_v25 = vadd.f32 1e-06, %v995_v34 }
 0x892   :  { %1371 = vrsqrt.f32 %v997_v25 }
 0x89b   :  { %v1370_v27 = vpop.eup %1369 }
 0x89c   :  { %v1000_v28 = vmul.f32 %v1370_v27, %v984_v11 }
 0x89e   :  { %v1006_v30 = vmul.f32 %v1005_v35, %v1000_v28 }
 0x89f   :  { %v1372_v31 = vpop.eup %1371 }
 0x8a0   :  { %v1008_v33 = vpack.c.bf16 %v1006_v30, %v1006_v30  ;;  %v1001_v37 = vmul.f32 %v1372_v31, %v985_v18 }
 0x8a2   :  { %1301 = vmatmul.mubr.msk.bf16.vlgmr.msra.gmra.mxu1 %vm179_vm1, %v1008_v33  ;;  %v1007_v38 = vmul.f32 %v1005_v35, %v1001_v37 }
 0x8a4   :  { %v1009_v39 = vpack.c.bf16 %v1007_v38, %v1007_v38 }
 0x8a6   :  { %1307 = vmatmul.mubr.msk.bf16.vlgmr.msra.gmra.mxu0 %vm179_vm1, %v1009_v39 }
 0x962   :  { %v1047_v40 = vpop.f32.mrf.mxu1 }
 0x963   :  { %v1098_v41 = vsel %vm1096_vm3, -3.4028235e+38, %v1047_v40 }
 0x964   :  { %1100 = vst.msk [vmem:[#allocation13] sm:$0xff] %vm737_vm2, %v1098_v41  ;;  %v1302_v10 = vpop.f32.mrf.mxu1 }
 0x966   :  { %v1050_v12 = vpop.f32.mrf.mxu1  ;;  %v1090_v42 = vpop.f32.mrf.mxu0 }
 0x967   :  { %v1099_v43 = vsel %vm1097_vm4, -3.4028235e+38, %v1090_v42 }
 0x968   :  { %1101 = vst.msk [vmem:[#allocation13 + $0x8] sm:$0xff] %vm737_vm2, %v1099_v43  ;;  %v1303_v44 = vpop.f32.mrf.mxu1  ;;  %v1308_v45 = vpop.f32.mrf.mxu0 }
 0x969   :  { %1504 = shalt.err (!%p1501_p6)
}
 0x96a   :  { %1113 = dma.vmem_to_hbm [thread:$0]  %s1108_s10, 256, %s1745_s7, [#allocation4], %s1525_s29, %s1525_s29, %s1526_s30   ;;  %v1093_v60 = vpop.f32.mrf.mxu0 }
 0x96c   :  { %v1309_v2 = vpop.f32.mrf.mxu0 }
 0x96d   :  { %1521 = dma.done.wait [#allocation4], 256  }
 0x96e   :  { %1522 = vsyncadd [#allocation4], 4294967040 }
 0x96f   :  { %1117 = vsyncpa [#allocation3], 1 }
 0x970   :  { %1118 = vsyncpa [#allocation6], 1 }
 0x971   :  { %1119 = vsyncpa [#allocation9], 1 }
 0x972   :  { %1120 = vsyncpa [#allocation12], 1 }
 0x973   :  { %1121 = vsyncpa [#allocation4], 1 }

</bundles_post_ra>
